<compile_context>
chip_gen: v5e
topology: v5e:2x2
jax: 0.10.0
libtpu: 0.0.40
codegen_flags: <defaults>
</compile_context>

<pallas_src>
import jax
import jax.numpy as jnp
from jax.experimental import pallas as pl
from jax.experimental.pallas import tpu as pltpu

MIN_VAL = 0.0
MAX_VAL = 6.0
MAX_TB = 8192          # max rows per batch tile (mem-bound sweet spot)


def _round_up(x, m):
    return ((x + m - 1) // m) * m


def linear_clamp_kernel(x_ref, w_ref, b_ref, o_ref):
    # x_ref: (TB, IN)  w_ref: (IN, OUT)  b_ref: (1, OUT)  o_ref: (TB, OUT)
    acc = jnp.dot(x_ref[...], w_ref[...], preferred_element_type=jnp.float32)
    acc = acc + b_ref[...]                       # broadcast bias over batch
    acc = jnp.maximum(acc, MIN_VAL)              # clamp_min
    acc = jnp.minimum(acc, MAX_VAL)              # clamp_max
    o_ref[...] = acc.astype(o_ref.dtype)


def linear_clamp(x, w, b):
    """x: (B, IN) f32, w: (IN, OUT) f32, b: (OUT,) f32 -> (B, OUT) f32."""
    B, IN = x.shape
    OUT = w.shape[1]
    b2 = b.reshape(1, OUT)

    # Minimal batch padding: only up to a multiple of 8 (sublane quantum).
    B_pad = _round_up(max(B, 8), 8)
    if B_pad != B:
        x_p = jnp.zeros((B_pad, IN), dtype=x.dtype).at[:B, :].set(x)
    else:
        x_p = x

    TB = min(MAX_TB, B_pad)          # B_pad is a multiple of 8, so TB is too
    n_tiles = pl.cdiv(B_pad, TB)     # last tile may be partial; Pallas masks it

    cost = pl.CostEstimate(
        flops=2 * B_pad * IN * OUT,
        transcendentals=0,
        bytes_accessed=4 * (B_pad * IN + IN * OUT + OUT + B_pad * OUT),
    )

    out_p = pl.pallas_call(
        linear_clamp_kernel,
        out_shape=jax.ShapeDtypeStruct((B_pad, OUT), x.dtype),
        grid_spec=pl.GridSpec(
            grid=(n_tiles,),
            in_specs=[
                pl.BlockSpec((TB, IN), lambda i: (i, 0)),      # x tile
                pl.BlockSpec((IN, OUT), lambda i: (0, 0)),     # W resident
                pl.BlockSpec((1, OUT), lambda i: (0, 0)),      # b resident
            ],
            out_specs=pl.BlockSpec((TB, OUT), lambda i: (i, 0)),
        ),
        compiler_params=pltpu.CompilerParams(
            dimension_semantics=("parallel",)),
        cost_estimate=cost,
    )(x_p, w, b2)

    # Strip the (at most 7-row) batch padding.
    return out_p[:B, :] if B_pad != B else out_p


if __name__ == "__main__":
    key = jax.random.PRNGKey(0)
    k_x, k_w, k_b = jax.random.split(key, 3)

    B, IN, OUT = 2, 16, 32  # small shapes consistent with nn.Linear(16, 32)

    x = jax.random.normal(k_x, (B, IN), dtype=jnp.float32)
    # Deterministic "Linear(16, 32)" parameters (kaiming-uniform-ish range).
    bound = 1.0 / jnp.sqrt(IN)
    # PyTorch weight is (OUT, IN); store transposed as (IN, OUT) for the kernel.
    w = jax.random.uniform(k_w, (IN, OUT), minval=-bound, maxval=bound,
                           dtype=jnp.float32)
    b = jax.random.uniform(k_b, (OUT,), minval=-bound, maxval=bound,
                           dtype=jnp.float32)

    out = linear_clamp(x, w, b)
    out = jax.block_until_ready(out)

    # Pure-JAX reference check.
    ref = jnp.clip(x @ w + b, MIN_VAL, MAX_VAL)
    assert out.shape == (B, OUT)
    assert jnp.allclose(out, ref, atol=1e-5, rtol=1e-5)

    print("KERNEL_OK")
</pallas_src>

<mosaic_0001>
module attributes {stable_mosaic.version = 11 : i64} {
  func.func @linear_clamp_kernel(%arg0: i32, %arg1: memref<8x16xf32, #tpu.memory_space<vmem>>, %arg2: memref<16x32xf32, #tpu.memory_space<vmem>>, %arg3: memref<1x32xf32, #tpu.memory_space<vmem>>, %arg4: memref<8x32xf32, #tpu.memory_space<vmem>>) attributes {dimension_semantics = [#tpu.dimension_semantics<parallel>], iteration_bounds = array<i64: 1>, scalar_prefetch = 0 : i64, scratch_operands = 0 : i64, tpu.core_type = #tpu.core_type<tc>, window_params = [{transform_indices = @transform_0, window_bounds = array<i64: 8, 16>}, {pipeline_mode = #tpu.pipeline_mode<synchronous>, transform_indices = @transform_1, window_bounds = array<i64: 16, 32>}, {pipeline_mode = #tpu.pipeline_mode<synchronous>, transform_indices = @transform_2, window_bounds = array<i64: 1, 32>}, {transform_indices = @transform_3, window_bounds = array<i64: 8, 32>}]} {
    %c0 = arith.constant 0 : index
    %c0_0 = arith.constant 0 : index
    %0 = vector.load %arg1[%c0, %c0_0] : memref<8x16xf32, #tpu.memory_space<vmem>>, vector<8x16xf32>
    %c0_1 = arith.constant 0 : index
    %c0_2 = arith.constant 0 : index
    %1 = vector.load %arg2[%c0_1, %c0_2] : memref<16x32xf32, #tpu.memory_space<vmem>>, vector<16x32xf32>
    %cst = arith.constant dense<0.000000e+00> : vector<8x32xf32>
    %2 = tpu.matmul %0, %1, %cst {dimension_numbers = #tpu.dot_dimension_numbers<[1], [0], [0], [1], [0, 0, 1, 1], [], []>} : vector<8x16xf32>, vector<16x32xf32>, vector<8x32xf32> -> vector<8x32xf32>
    %c0_3 = arith.constant 0 : index
    %c0_4 = arith.constant 0 : index
    %3 = vector.load %arg3[%c0_3, %c0_4] : memref<1x32xf32, #tpu.memory_space<vmem>>, vector<1x32xf32>
    %4 = vector.broadcast %3 : vector<1x32xf32> to vector<8x32xf32>
    %5 = arith.addf %2, %4 : vector<8x32xf32>
    %cst_5 = arith.constant 0.000000e+00 : f32
    %6 = vector.broadcast %cst_5 : f32 to vector<8x32xf32>
    %7 = arith.maximumf %5, %6 : vector<8x32xf32>
    %cst_6 = arith.constant 6.000000e+00 : f32
    %8 = vector.broadcast %cst_6 : f32 to vector<8x32xf32>
    %9 = arith.minimumf %7, %8 : vector<8x32xf32>
    %c0_7 = arith.constant 0 : index
    %c0_8 = arith.constant 0 : index
    %10 = vector.load %arg4[%c0_7, %c0_8] : memref<8x32xf32, #tpu.memory_space<vmem>>, vector<8x32xf32>
    tpu.vector_store %arg4[%c0_7, %c0_8], %9 {strides = array<i32>} : memref<8x32xf32, #tpu.memory_space<vmem>>, vector<8x32xf32>,
    return
  }
  func.func @transform_0(%arg0: i32) -> (i32, i32) {
    %c0_i32 = arith.constant 0 : i32
    %c0_i32_0 = arith.constant 0 : i32
    return %arg0, %c0_i32 : i32, i32
  }
  func.func @transform_1(%arg0: i32) -> (i32, i32) {
    %c0_i32 = arith.constant 0 : i32
    %c0_i32_0 = arith.constant 0 : i32
    %c0_i32_1 = arith.constant 0 : i32
    return %c0_i32, %c0_i32_0 : i32, i32
  }
  func.func @transform_2(%arg0: i32) -> (i32, i32) {
    %c0_i32 = arith.constant 0 : i32
    %c0_i32_0 = arith.constant 0 : i32
    %c0_i32_1 = arith.constant 0 : i32
    return %c0_i32, %c0_i32_0 : i32, i32
  }
  func.func @transform_3(%arg0: i32) -> (i32, i32) {
    %c0_i32 = arith.constant 0 : i32
    %c0_i32_0 = arith.constant 0 : i32
    return %arg0, %c0_i32 : i32, i32
  }
}

</mosaic_0001>

<bundles_post_ra>
// kernel: tpu_custom_call.1
= control target key start
LH: loop header
LB: loop body
LE: loop exit
PB: predicated region body
PF: predicated region fallthrough
CT: control target
= control target key end

     0   :  { %8 = vsyncpa [#allocation3], 0  ;;  %s220_s0 = inlined_call_operand.hbm [shape: f32[8,16], index: 0, kind: input, shape index: {}]   ;;  %s221_s1 = inlined_call_operand.hbm [shape: f32[16,32], index: 1, kind: input, shape index: {}]   ;;  %s222_s2 = inlined_call_operand.vmem [shape: f32[1,32], index: 2, kind: input, shape index: {}]   ;;  %s223_s3 = inlined_call_operand.hbm [shape: f32[8,32], index: 3, kind: output, shape index: {}]  }
   0x1   :  { %9 = vsyncpa [#allocation6], 0 }
   0x2   :  { %10 = vsyncpa [#allocation4], 0  ;;  %s16_s14 = sshll.u32 %s220_s0, 4  ;;  %s183_s15 = smov [#allocation2]   ;;  %s17_s14 = int_to_ptr.hbm [resolvable:$true] %s16_s14 }
   0x3   :  { %s18_s16 = sshll.u32 %s183_s15, 4  ;;  %s26_s19 = sshll.u32 %s221_s1, 4  ;;  %s19_s16 = int_to_ptr.vmem [resolvable:$true] %s18_s16  ;;  %s27_s19 = int_to_ptr.hbm [resolvable:$true] %s26_s19 }
   0x4   :  { %21 = dma.hbm_to_vmem [thread:$0]  %s17_s14, 128, %s19_s16, [#allocation3]  }
   0x5   :  { %s184_s20 = smov [#allocation5]   ;;  %s185_s22 = smov 128  }
   0x6   :  { %s28_s21 = sshll.u32 %s184_s20, 4  ;;  %s186_s23 = smov 8   ;;  %s29_s21 = int_to_ptr.vmem [resolvable:$true] %s28_s21 }
   0x7   :  { %34 = dma.hbm_to_vmem [thread:$0]  %s27_s19, 256, %s29_s21, [#allocation6], %s185_s22, %s185_s22, %s186_s23  }
   0x8   :  { %177 = dma.done.wait [#allocation3], 128  }
   0x9   :  { %178 = vsyncadd [#allocation3], 4294967168 }
   0xa   :  { %179 = dma.done.wait [#allocation6], 256  }
   0xb   :  { %180 = vsyncadd [#allocation6], 4294967040  ;;  %v47_v0 = vld [vmem:[#allocation5 + $0x8] sm:$0xff]  ;;  %v46_v1 = vld [vmem:[#allocation5] sm:$0xff]  ;;  %vm52_vm0 = vcmask 130048   ;;  %s187_s24 = smov [#allocation7]  }
   0xc   :  { %70 = vmatpush.msra.mxu0 %v47_v0  ;;  %v45_v2 = vld [vmem:[#allocation2] sm:$0xff]  ;;  %s85_s25 = sshll.u32 %s187_s24, 4  ;;  %s87_s28 = sshll.u32 %s223_s3, 4  ;;  %vm78_vm1 = vcmask 261120   ;;  %s86_s25 = int_to_ptr.vmem [resolvable:$true] %s85_s25  ;;  %s88_s28 = int_to_ptr.hbm [resolvable:$true] %s87_s28 }
   0xd   :  { %v104_v3 = vld [vmem:[%s222_s2] ss:$0 sm:$0xff] }
   0xe   :  { %71 = vmatpush.msra.mxu0 %v46_v1 }
   0xf   :  { %98 = vmatmul.msk.f32.vlgmr.msra.gmra.mxu0 %vm52_vm0, %v45_v2 }
  0x8c   :  { %v73_v4 = vpop.f32.mrf.mxu0 }
  0x8d   :  { %v74_v5 = vadd.f32 %v104_v3, %v73_v4 }
  0x8f   :  { %v76_v6 = vmax.f32 %v74_v5, 0.0 }
  0x91   :  { %v77_v7 = vmin.f32 %v76_v6, 6.0 }
  0x93   :  { %79 = vst.msk [vmem:[#allocation7] sm:$0xff] %vm78_vm1, %v77_v7 }
  0x94   :  { %90 = dma.vmem_to_hbm [thread:$0]  %s86_s25, 128, %s88_s28, [#allocation4]  }
  0x95   :  { %181 = dma.done.wait [#allocation4], 128  }
  0x96   :  { %182 = vsyncadd [#allocation4], 4294967168 }
  0x97   :  { %95 = vsyncpa [#allocation3], 1 }
  0x98   :  { %96 = vsyncpa [#allocation6], 1 }
  0x99   :  { %97 = vsyncpa [#allocation4], 1 }

</bundles_post_ra>
